<compile_context>
chip_gen: v5e
topology: v5e:2x2
jax: 0.10.0
libtpu: 0.0.40
codegen_flags: <defaults>
</compile_context>

<pallas_src>
import jax
import jax.numpy as jnp
from jax.experimental import pallas as pl
from jax.experimental.pallas import tpu as pltpu


# ----------------------------------------------------------------------------
# Per-generation VMEM planning & block-size helpers
# ----------------------------------------------------------------------------
_MIB = 1024 * 1024


def _vmem_plan():
    """Returns (stream_budget_bytes, vmem_limit_bytes) for this TPU generation."""
    cap = None
    try:
        cap = getattr(pltpu.get_tpu_info(), "vmem_capacity_bytes", None)
    except Exception:
        cap = None
    if cap is not None and cap >= 96 * _MIB:
        # v5e / v6e: 128 MiB physical VMEM -> bigger blocks, fewer grid steps.
        return 48 * _MIB, 80 * _MIB
    # v7x (64 MiB physical) or unknown: stay conservative so the 2x-buffered
    # streams + outputs + scratch never approach the physical capacity.
    return 32 * _MIB, 48 * _MIB


def _largest_divisor_leq(n, bound):
    bound = max(1, min(n, bound))
    for d in range(bound, 0, -1):
        if n % d == 0:
            return d
    return 1


def _choose_bblk(batch, elems_per_item, itemsize, n_streams, stream_budget):
    """Batch items per grid step.

    Budget: n_streams inputs x 2 pipeline buffers x block_bytes must stay
    inside `stream_budget`.  The result is a divisor of `batch` so no batch
    padding (and thus no extra HBM copy) is ever needed.
    """
    per_block_bytes = stream_budget // (2 * max(n_streams, 1))
    vmem_bblk = max(1, per_block_bytes // max(elems_per_item * itemsize, 1))
    if batch >= 8:
        # Keep >= ~4 grid steps so double buffering hides the first/last DMA.
        vmem_bblk = min(vmem_bblk, max(1, batch // 4))
    return _largest_divisor_leq(batch, vmem_bblk)


def _choose_ttile(t_in, t_out, itemsize, target_bytes=2 * _MIB):
    """Time-tile for the alignment kernel: multiple-of-128 divisor of T_out,
    ~<= target_bytes per (1 item, T_in, ttile) slab; full T_out if small."""
    if t_out <= 128 or t_in * t_out * itemsize <= target_bytes:
        return t_out
    max_ttile = max(128, (target_bytes // max(t_in * itemsize, 1)) // 128 * 128)
    tt = min(max_ttile, t_out) // 128 * 128
    while tt >= 128:
        if t_out % tt == 0:
            return tt
        tt -= 128
    return t_out  # no clean multiple-of-128 divisor: fall back to a single tile


# ----------------------------------------------------------------------------
# Kernel 1: fused masked-L2 partial sums for pre- and postnet-outputs.
#   inputs : lengths (Bblk,1,1) i32, pre/post/target (Bblk, M, T)
#   outputs: per-step lane-dense partial sums (1, 1, T) for each loss
# ----------------------------------------------------------------------------
def _fused_mse_kernel(len_ref, pre_ref, post_ref, tgt_ref,
                      pre_out_ref, post_out_ref):
    t = tgt_ref[...].astype(jnp.float32)                       # (Bblk, M, T)
    lens = len_ref[...]                                        # (Bblk, 1, 1)

    # Lane-only iota; the compare broadcasts it against (Bblk,1,1) lengths.
    col = jax.lax.broadcasted_iota(jnp.int32, (1, 1, t.shape[-1]), 2)
    valid = col < lens                                          # (Bblk, 1, T)

    d_pre = pre_ref[...].astype(jnp.float32) - t
    d_post = post_ref[...].astype(jnp.float32) - t
    pre_sq = jnp.where(valid, d_pre * d_pre, 0.0)
    post_sq = jnp.where(valid, d_post * d_post, 0.0)

    # Reduce batch then sublanes; keep the lane (T) dim so the store is a
    # lane-dense row, not a masked (1,1) scalar store.
    pre_out_ref[...] = jnp.sum(jnp.sum(pre_sq, axis=0), axis=0,
                               keepdims=True)[None]             # (1,1,T)
    post_out_ref[...] = jnp.sum(jnp.sum(post_sq, axis=0), axis=0,
                                keepdims=True)[None]


def backbone_mse_losses(pre_outputs, postnet_outputs, mel_targets,
                        output_lengths):
    """MaskedL2Loss for pre & postnet outputs, fused into one HBM pass."""
    B, M, T = pre_outputs.shape
    itemsize = jnp.dtype(pre_outputs.dtype).itemsize
    stream_budget, vmem_limit = _vmem_plan()
    bblk = _choose_bblk(B, M * T, itemsize, n_streams=3,
                        stream_budget=stream_budget)
    nb = B // bblk                                   # bblk divides B exactly

    lens = output_lengths.astype(jnp.int32).reshape(B, 1, 1)

    mel_spec = pl.BlockSpec((bblk, M, T), lambda i: (i, 0, 0))
    len_spec = pl.BlockSpec((bblk, 1, 1), lambda i: (i, 0, 0))
    out_spec = pl.BlockSpec((1, 1, T), lambda i: (i, 0, 0))

    pre_part, post_part = pl.pallas_call(
        _fused_mse_kernel,
        out_shape=(jax.ShapeDtypeStruct((nb, 1, T), jnp.float32),
                   jax.ShapeDtypeStruct((nb, 1, T), jnp.float32)),
        grid=(nb,),
        in_specs=[len_spec, mel_spec, mel_spec, mel_spec],
        out_specs=(out_spec, out_spec),
        compiler_params=pltpu.CompilerParams(
            dimension_semantics=("parallel",),
            vmem_limit_bytes=vmem_limit),
    )(lens, pre_outputs, postnet_outputs, mel_targets)

    denom = jnp.float32(B * M * T)                   # mean over ALL elements
    return jnp.sum(pre_part) / denom, jnp.sum(post_part) / denom


# ----------------------------------------------------------------------------
# Kernel 2: fused BCE partial sums + masked duration-L2 partial sums,
#           with an inner T_out tiling (trailing "arbitrary" grid axis).
#   inputs : lengths (Bblk,1,1) i32, alignments/targets (Bblk, Tin, Ttile)
#   outputs: bce partial (1,1,Ttile) per (i,t) step, dur partial (1,1,Tin)
#            written on the last time tile of each batch block
#   scratch: per-token duration difference accumulator (Bblk, Tin) f32
# ----------------------------------------------------------------------------
def _alignment_kernel(len_ref, align_ref, tgt_ref,
                      bce_out_ref, dur_out_ref, dur_acc):
    t_idx = pl.program_id(1)

    p = align_ref[...].astype(jnp.float32)           # (Bblk, Tin, Ttile)
    t = tgt_ref[...].astype(jnp.float32)

    @pl.when(t_idx == 0)
    def _():
        dur_acc[...] = jnp.zeros_like(dur_acc)

    # torch.nn.BCELoss: -(t*log(p) + (1-t)*log(1-p)), logs clamped at -100.
    # Two-log form kept so soft alignment targets stay exact.
    log_p = jnp.maximum(jnp.log(p), -100.0)
    log_1mp = jnp.maximum(jnp.log(1.0 - p), -100.0)
    bce = -(t * log_p + (1.0 - t) * log_1mp)
    bce_out_ref[...] = jnp.sum(jnp.sum(bce, axis=0), axis=0,
                               keepdims=True)[None]            # (1,1,Ttile)

    # durations = sum over output frames; accumulate the (pred - tgt)
    # difference across time tiles, square/mask/reduce on the last tile.
    dur_acc[...] += jnp.sum(p - t, axis=2)                     # (Bblk, Tin)

    @pl.when(t_idx == pl.num_programs(1) - 1)
    def _():
        diff = dur_acc[...]
        d2 = diff * diff
        lens = len_ref[...][:, :, 0]                           # (Bblk, 1)
        tok = jax.lax.broadcasted_iota(jnp.int32, (1, d2.shape[1]), 1)
        d2 = jnp.where(tok < lens, d2, 0.0)
        dur_out_ref[...] = jnp.sum(d2, axis=0, keepdims=True)[None]  # (1,1,Tin)


def alignment_losses(alignments, alignments_targets, input_lengths):
    B, Tin, Tout = alignments.shape
    itemsize = jnp.dtype(alignments.dtype).itemsize
    stream_budget, vmem_limit = _vmem_plan()

    ttile = _choose_ttile(Tin, Tout, itemsize)
    nt = Tout // ttile
    bblk = _choose_bblk(B, Tin * ttile, itemsize, n_streams=2,
                        stream_budget=stream_budget)
    nb = B // bblk

    lens = input_lengths.astype(jnp.int32).reshape(B, 1, 1)

    al_spec = pl.BlockSpec((bblk, Tin, ttile), lambda i, t: (i, 0, t))
    len_spec = pl.BlockSpec((bblk, 1, 1), lambda i, t: (i, 0, 0))
    bce_spec = pl.BlockSpec((1, 1, ttile), lambda i, t: (i, 0, t))
    dur_spec = pl.BlockSpec((1, 1, Tin), lambda i, t: (i, 0, 0))

    bce_part, dur_part = pl.pallas_call(
        _alignment_kernel,
        out_shape=(jax.ShapeDtypeStruct((nb, 1, Tout), jnp.float32),
                   jax.ShapeDtypeStruct((nb, 1, Tin), jnp.float32)),
        grid=(nb, nt),
        in_specs=[len_spec, al_spec, al_spec],
        out_specs=(bce_spec, dur_spec),
        scratch_shapes=[pltpu.VMEM((bblk, Tin), jnp.float32)],
        compiler_params=pltpu.CompilerParams(
            dimension_semantics=("parallel", "arbitrary"),
            vmem_limit_bytes=vmem_limit),
    )(lens, alignments, alignments_targets)

    alignment_loss = jnp.sum(bce_part) / jnp.float32(B * Tin * Tout)
    durations_loss = jnp.sum(dur_part) / jnp.float32(B * Tin)
    return alignment_loss, durations_loss


# ----------------------------------------------------------------------------
# DurIANLoss (same semantics as the PyTorch module)
# ----------------------------------------------------------------------------
class DurIANLoss:
    def __init__(self, config):
        self.solve_alignments_as_bce = config['solve_alignments_as_bce']
        self.solve_alignments_as_mse = config['solve_alignments_as_mse']
        assert self.solve_alignments_as_bce or self.solve_alignments_as_mse
        self._joint_minimization = (self.solve_alignments_as_bce
                                    and self.solve_alignments_as_mse)
        self.loss_stats_ = None

    @property
    def loss_stats(self):
        return self.loss_stats_

    def __call__(self, outputs, x):
        pre_outputs = outputs['pre_outputs']
        postnet_outputs = outputs['postnet_outputs']
        mel_targets = x['mels_padded']
        output_lengths = x['output_lengths']

        # Fused single HBM pass over (pre, postnet, target).
        pre_loss, postnet_loss = backbone_mse_losses(
            pre_outputs, postnet_outputs, mel_targets, output_lengths)
        backbone_model_loss = pre_loss + postnet_loss

        alignments = outputs['alignments']
        alignments_targets = x['alignments_padded']
        input_lengths = x['input_lengths']
        alignment_loss, durations_loss = alignment_losses(
            alignments, alignments_targets, input_lengths)

        # Identical branch structure to the reference PyTorch module
        # (MSE-only config intentionally yields duration_model_loss == 0).
        durations_loss_coef = 1e-05 if self._joint_minimization else 1
        duration_model_loss = (
            (durations_loss_coef * durations_loss if self.solve_alignments_as_bce else 0)
            + (alignment_loss if self.solve_alignments_as_bce else 0))

        self.loss_stats_ = {
            'backbone_model/pre_loss': pre_loss,
            'backbone_model/postnet_loss': postnet_loss,
            'backbone_model/total_loss': backbone_model_loss,
            'duration_model/durations_loss': durations_loss,
            'duration_model/alignment_loss': alignment_loss,
            'duration_model/total_loss': duration_model_loss,
        }
        return backbone_model_loss, duration_model_loss


# ----------------------------------------------------------------------------
# Pure-JAX reference (for sanity checking the kernels)
# ----------------------------------------------------------------------------
def _ref_masked_mse(o, t, lengths):
    T = o.shape[-1]
    valid = jnp.arange(T)[None, None, :] < lengths[:, None, None]
    return jnp.where(valid, (o - t) ** 2, 0.0).mean()


def _ref_losses(outputs, x):
    pre = _ref_masked_mse(outputs['pre_outputs'], x['mels_padded'],
                          x['output_lengths'])
    post = _ref_masked_mse(outputs['postnet_outputs'], x['mels_padded'],
                           x['output_lengths'])
    p, t = outputs['alignments'], x['alignments_padded']
    bce = (-(t * jnp.maximum(jnp.log(p), -100.0)
             + (1.0 - t) * jnp.maximum(jnp.log(1.0 - p), -100.0))).mean()
    dur_p, dur_t = p.sum(axis=2), t.sum(axis=2)
    _, Tin = dur_p.shape
    valid = jnp.arange(Tin)[None, :] < x['input_lengths'][:, None]
    dur = jnp.where(valid, (dur_p - dur_t) ** 2, 0.0).mean()
    backbone = pre + post
    duration = 1e-05 * dur + bce
    return backbone, duration


if __name__ == "__main__":
    key = jax.random.PRNGKey(0)
    B, n_mels, T_out, T_in = 2, 8, 16, 8

    k1, k2, k3, k4, k5 = jax.random.split(key, 5)
    pre_outputs = jax.random.normal(k1, (B, n_mels, T_out), dtype=jnp.float32)
    postnet_outputs = jax.random.normal(k2, (B, n_mels, T_out), dtype=jnp.float32)
    mels_padded = jax.random.normal(k3, (B, n_mels, T_out), dtype=jnp.float32)
    alignments = jax.nn.sigmoid(
        jax.random.normal(k4, (B, T_in, T_out), dtype=jnp.float32))
    alignments_padded = (jax.random.uniform(k5, (B, T_in, T_out)) > 0.5
                         ).astype(jnp.float32)
    output_lengths = jnp.array([T_out, 12], dtype=jnp.int32)
    input_lengths = jnp.array([T_in, 6], dtype=jnp.int32)

    outputs = {'pre_outputs': pre_outputs,
               'postnet_outputs': postnet_outputs,
               'alignments': alignments}
    x = {'mels_padded': mels_padded,
         'output_lengths': output_lengths,
         'alignments_padded': alignments_padded,
         'input_lengths': input_lengths}

    config = {'solve_alignments_as_bce': True, 'solve_alignments_as_mse': True}
    criterion = DurIANLoss(config)

    backbone_loss, duration_loss = criterion(outputs, x)
    backbone_loss = jax.block_until_ready(backbone_loss)
    duration_loss = jax.block_until_ready(duration_loss)

    ref_backbone, ref_duration = _ref_losses(outputs, x)
    assert jnp.allclose(backbone_loss, ref_backbone, rtol=1e-4, atol=1e-5), (
        backbone_loss, ref_backbone)
    assert jnp.allclose(duration_loss, ref_duration, rtol=1e-4, atol=1e-5), (
        duration_loss, ref_duration)

    print("KERNEL_OK")
</pallas_src>

<mosaic_0001>
module attributes {stable_mosaic.version = 11 : i64} {
  func.func @_fused_mse_kernel(%arg0: i32, %arg1: memref<2x1x1xi32, #tpu.memory_space<vmem>>, %arg2: memref<2x8x16xf32, #tpu.memory_space<vmem>>, %arg3: memref<2x8x16xf32, #tpu.memory_space<vmem>>, %arg4: memref<2x8x16xf32, #tpu.memory_space<vmem>>, %arg5: memref<1x1x16xf32, #tpu.memory_space<vmem>>, %arg6: memref<1x1x16xf32, #tpu.memory_space<vmem>>) attributes {dimension_semantics = [#tpu.dimension_semantics<parallel>], iteration_bounds = array<i64: 1>, scalar_prefetch = 0 : i64, scratch_operands = 0 : i64, tpu.core_type = #tpu.core_type<tc>, window_params = [{transform_indices = @transform_0, window_bounds = array<i64: 2, 1, 1>}, {transform_indices = @transform_1, window_bounds = array<i64: 2, 8, 16>}, {transform_indices = @transform_2, window_bounds = array<i64: 2, 8, 16>}, {transform_indices = @transform_3, window_bounds = array<i64: 2, 8, 16>}, {transform_indices = @transform_4, window_bounds = array<i64: 1, 1, 16>}, {transform_indices = @transform_5, window_bounds = array<i64: 1, 1, 16>}]} {
    %c0 = arith.constant 0 : index
    %c0_0 = arith.constant 0 : index
    %c0_1 = arith.constant 0 : index
    %0 = vector.load %arg4[%c0, %c0_0, %c0_1] : memref<2x8x16xf32, #tpu.memory_space<vmem>>, vector<2x8x16xf32>
    %c0_2 = arith.constant 0 : index
    %c0_3 = arith.constant 0 : index
    %c0_4 = arith.constant 0 : index
    %1 = vector.load %arg1[%c0_2, %c0_3, %c0_4] : memref<2x1x1xi32, #tpu.memory_space<vmem>>, vector<2x1x1xi32>
    %2 = tpu.iota {dimensions = array<i32: 2>} : vector<1x1x16xi32>
    %3 = vector.broadcast %2 : vector<1x1x16xi32> to vector<2x1x16xi32>
    %4 = vector.broadcast %1 : vector<2x1x1xi32> to vector<2x1x16xi32>
    %5 = arith.cmpi slt, %3, %4 : vector<2x1x16xi32>
    %c0_5 = arith.constant 0 : index
    %c0_6 = arith.constant 0 : index
    %c0_7 = arith.constant 0 : index
    %6 = vector.load %arg2[%c0_5, %c0_6, %c0_7] : memref<2x8x16xf32, #tpu.memory_space<vmem>>, vector<2x8x16xf32>
    %7 = arith.subf %6, %0 : vector<2x8x16xf32>
    %c0_8 = arith.constant 0 : index
    %c0_9 = arith.constant 0 : index
    %c0_10 = arith.constant 0 : index
    %8 = vector.load %arg3[%c0_8, %c0_9, %c0_10] : memref<2x8x16xf32, #tpu.memory_space<vmem>>, vector<2x8x16xf32>
    %9 = arith.subf %8, %0 : vector<2x8x16xf32>
    %10 = arith.mulf %7, %7 : vector<2x8x16xf32>
    %cst = arith.constant 0.000000e+00 : f32
    %11 = vector.shape_cast %5 : vector<2x1x16xi1> to vector<2x1x16xi1>
    %12 = vector.broadcast %11 : vector<2x1x16xi1> to vector<2x8x16xi1>
    %13 = vector.broadcast %cst : f32 to vector<2x8x16xf32>
    %14 = arith.select %12, %10, %13 : vector<2x8x16xi1>, vector<2x8x16xf32>
    %15 = arith.mulf %9, %9 : vector<2x8x16xf32>
    %cst_11 = arith.constant 0.000000e+00 : f32
    %16 = vector.shape_cast %5 : vector<2x1x16xi1> to vector<2x1x16xi1>
    %17 = vector.broadcast %16 : vector<2x1x16xi1> to vector<2x8x16xi1>
    %18 = vector.broadcast %cst_11 : f32 to vector<2x8x16xf32>
    %19 = arith.select %17, %15, %18 : vector<2x8x16xi1>, vector<2x8x16xf32>
    %cst_12 = arith.constant dense<0.000000e+00> : vector<8x16xf32>
    %20 = vector.multi_reduction <add>, %14, %cst_12 [0] : vector<2x8x16xf32> to vector<8x16xf32>
    %cst_13 = arith.constant dense<0.000000e+00> : vector<16xf32>
    %21 = vector.multi_reduction <add>, %20, %cst_13 [0] : vector<8x16xf32> to vector<16xf32>
    %22 = vector.shape_cast %21 : vector<16xf32> to vector<1x16xf32>
    %23 = vector.shape_cast %22 : vector<1x16xf32> to vector<1x1x16xf32>
    %c0_14 = arith.constant 0 : index
    %c0_15 = arith.constant 0 : index
    %c0_16 = arith.constant 0 : index
    %24 = vector.load %arg5[%c0_14, %c0_15, %c0_16] : memref<1x1x16xf32, #tpu.memory_space<vmem>>, vector<1x1x16xf32>
    tpu.vector_store %arg5[%c0_14, %c0_15, %c0_16], %23 {strides = array<i32>} : memref<1x1x16xf32, #tpu.memory_space<vmem>>, vector<1x1x16xf32>,
    %cst_17 = arith.constant dense<0.000000e+00> : vector<8x16xf32>
    %25 = vector.multi_reduction <add>, %19, %cst_17 [0] : vector<2x8x16xf32> to vector<8x16xf32>
    %cst_18 = arith.constant dense<0.000000e+00> : vector<16xf32>
    %26 = vector.multi_reduction <add>, %25, %cst_18 [0] : vector<8x16xf32> to vector<16xf32>
    %27 = vector.shape_cast %26 : vector<16xf32> to vector<1x16xf32>
    %28 = vector.shape_cast %27 : vector<1x16xf32> to vector<1x1x16xf32>
    %c0_19 = arith.constant 0 : index
    %c0_20 = arith.constant 0 : index
    %c0_21 = arith.constant 0 : index
    %29 = vector.load %arg6[%c0_19, %c0_20, %c0_21] : memref<1x1x16xf32, #tpu.memory_space<vmem>>, vector<1x1x16xf32>
    tpu.vector_store %arg6[%c0_19, %c0_20, %c0_21], %28 {strides = array<i32>} : memref<1x1x16xf32, #tpu.memory_space<vmem>>, vector<1x1x16xf32>,
    return
  }
  func.func @transform_0(%arg0: i32) -> (i32, i32, i32) {
    %c0_i32 = arith.constant 0 : i32
    %c0_i32_0 = arith.constant 0 : i32
    %c0_i32_1 = arith.constant 0 : i32
    return %arg0, %c0_i32, %c0_i32_0 : i32, i32, i32
  }
  func.func @transform_1(%arg0: i32) -> (i32, i32, i32) {
    %c0_i32 = arith.constant 0 : i32
    %c0_i32_0 = arith.constant 0 : i32
    %c0_i32_1 = arith.constant 0 : i32
    return %arg0, %c0_i32, %c0_i32_0 : i32, i32, i32
  }
  func.func @transform_2(%arg0: i32) -> (i32, i32, i32) {
    %c0_i32 = arith.constant 0 : i32
    %c0_i32_0 = arith.constant 0 : i32
    %c0_i32_1 = arith.constant 0 : i32
    return %arg0, %c0_i32, %c0_i32_0 : i32, i32, i32
  }
  func.func @transform_3(%arg0: i32) -> (i32, i32, i32) {
    %c0_i32 = arith.constant 0 : i32
    %c0_i32_0 = arith.constant 0 : i32
    %c0_i32_1 = arith.constant 0 : i32
    return %arg0, %c0_i32, %c0_i32_0 : i32, i32, i32
  }
  func.func @transform_4(%arg0: i32) -> (i32, i32, i32) {
    %c0_i32 = arith.constant 0 : i32
    %c0_i32_0 = arith.constant 0 : i32
    %c0_i32_1 = arith.constant 0 : i32
    return %arg0, %c0_i32, %c0_i32_0 : i32, i32, i32
  }
  func.func @transform_5(%arg0: i32) -> (i32, i32, i32) {
    %c0_i32 = arith.constant 0 : i32
    %c0_i32_0 = arith.constant 0 : i32
    %c0_i32_1 = arith.constant 0 : i32
    return %arg0, %c0_i32, %c0_i32_0 : i32, i32, i32
  }
}

</mosaic_0001>

<bundles_post_ra>
// kernel: tpu_custom_call.1
= control target key start
LH: loop header
LB: loop body
LE: loop exit
PB: predicated region body
PF: predicated region fallthrough
CT: control target
= control target key end

     0   :  { %11 = vsyncpa [#allocation3], 0  ;;  %s358_s0 = inlined_call_operand.vmem [shape: s32[2,1,1], index: 0, kind: input, shape index: {}]   ;;  %s359_s1 = inlined_call_operand.hbm [shape: f32[2,8,16], index: 1, kind: input, shape index: {}]   ;;  %s360_s2 = inlined_call_operand.hbm [shape: f32[2,8,16], index: 2, kind: input, shape index: {}]   ;;  %s361_s3 = inlined_call_operand.hbm [shape: f32[2,8,16], index: 3, kind: input, shape index: {}]   ;;  %s362_s4 = inlined_call_operand.hbm [shape: f32[1,1,16], index: 4, kind: output, shape index: {0}]   ;;  %s363_s5 = inlined_call_operand.hbm [shape: f32[1,1,16], index: 5, kind: output, shape index: {1}]  }
   0x1   :  { %12 = vsyncpa [#allocation6], 0 }
   0x2   :  { %13 = vsyncpa [#allocation4], 0 }
   0x3   :  { %14 = vsyncpa [#allocation10], 0  ;;  %s34_s20 = sshll.u32 %s360_s2, 4  ;;  %s299_s21 = smov [#allocation5]   ;;  %s35_s20 = int_to_ptr.hbm [resolvable:$true] %s34_s20 }
   0x4   :  { %s36_s22 = sshll.u32 %s299_s21, 4  ;;  %s21_s25 = sshll.u32 %s359_s1, 4  ;;  %s37_s22 = int_to_ptr.vmem [resolvable:$true] %s36_s22  ;;  %s22_s25 = int_to_ptr.hbm [resolvable:$true] %s21_s25 }
   0x5   :  { %s300_s26 = smov 128   ;;  %s301_s27 = smov 8  }
   0x6   :  { %42 = dma.hbm_to_vmem [thread:$0]  %s35_s20, 256, %s37_s22, [#allocation6], %s300_s26, %s300_s26, %s301_s27  }
   0x7   :  { %s302_s28 = smov [#allocation2]   ;;  %s47_s7 = sshll.u32 %s361_s3, 4  ;;  %s48_s7 = int_to_ptr.hbm [resolvable:$true] %s47_s7 }
   0x8   :  { %s23_s29 = sshll.u32 %s302_s28, 4  ;;  %s303_s2 = smov [#allocation7]   ;;  %s24_s29 = int_to_ptr.vmem [resolvable:$true] %s23_s29 }
   0x9   :  { %29 = dma.hbm_to_vmem [thread:$0]  %s22_s25, 256, %s24_s29, [#allocation3], %s300_s26, %s300_s26, %s301_s27  }
   0xa   :  { %s49_s8 = sshll.u32 %s303_s2, 4  ;;  %s50_s8 = int_to_ptr.vmem [resolvable:$true] %s49_s8 }
   0xb   :  { %55 = dma.hbm_to_vmem [thread:$0]  %s48_s7, 256, %s50_s8, [#allocation6], %s300_s26, %s300_s26, %s301_s27  }
   0xc   :  { %291 = dma.done.wait [#allocation3], 256  }
   0xd   :  { %292 = vsyncadd [#allocation3], 4294967040 }
   0xe   :  { %293 = dma.done.wait [#allocation6], 512  }
   0xf   :  { %294 = vsyncadd [#allocation6], 4294966784  ;;  %v304_v0 = vmov 0   ;;  %v70_v1 = vld [vmem:[%s358_s0] sm:$0x1]  ;;  %v72_v3 = vlaneseq  ;;  %v88_v5 = vld [vmem:[#allocation5] sm:$0xff] }
  0x10   :  { %170 = vset.pattern.permute.xlu0 %v304_v0  ;;  %v71_v2 = vld [vmem:[%s358_s0 + $0x1] sm:$0x1]  ;;  %v85_v8 = vld [vmem:[#allocation2 + $0x8] sm:$0xff]  ;;  %v89_v9 = vld [vmem:[#allocation5 + $0x8] sm:$0xff]  ;;  %vm104_vm1 = vcmask 130048   ;;  %s305_s0 = smov [#allocation8]  }
  0x11   :  { %75 = vperm.xlu0 %170, %v70_v1   ;;  %v84_v4 = vld [vmem:[#allocation2] sm:$0xff]  ;;  %v69_v10 = vld [vmem:[#allocation7 + $0x8] sm:$0xff]  ;;  %v73_v13 = vand.u32 127, %v72_v3  ;;  %s133_s11 = sshll.u32 %s305_s0, 4  ;;  %s135_s14 = sshll.u32 %s362_s4, 4  ;;  %vm115_vm3 = vcmask 122880   ;;  %s134_s11 = int_to_ptr.vmem [resolvable:$true] %s133_s11  ;;  %s136_s14 = int_to_ptr.hbm [resolvable:$true] %s135_s14 }
  0x12   :  { %v68_v6 = vld [vmem:[#allocation7] sm:$0xff]  ;;  %v87_v15 = vsub.f32 %v85_v8, %v69_v10  ;;  %v91_v16 = vsub.f32 %v89_v9, %v69_v10  ;;  %s306_s15 = smov [#allocation9]   ;;  %s146_s19 = sshll.u32 %s363_s5, 4  ;;  %s147_s19 = int_to_ptr.hbm [resolvable:$true] %s146_s19 }
  0x13   :  { %v86_v11 = vsub.f32 %v84_v4, %v68_v6  ;;  %v90_v12 = vsub.f32 %v88_v5, %v68_v6  ;;  %s144_s16 = sshll.u32 %s306_s15, 4  ;;  %s145_s16 = int_to_ptr.vmem [resolvable:$true] %s144_s16 }
  0x14   :  { %v93_v20 = vmul.f32 %v87_v15, %v87_v15  ;;  %v101_v21 = vmul.f32 %v91_v16, %v91_v16 }
  0x15   :  { %v92_v17 = vmul.f32 %v86_v11, %v86_v11  ;;  %v100_v18 = vmul.f32 %v90_v12, %v90_v12 }
  0x19   :  { %79 = vperm.xlu0 %170, %v71_v2  }
  0x83   :  { %v76_v7 = vpop.permute.xlu0 %75 }
  0x84   :  { %v77_v14 = vperm.slane %v76_v7, 0 }
  0x86   :  { %vm82_vm0 = vcmp.lt.s32.totalorder %v73_v13, %v77_v14 }
  0x87   :  { %v98_v23 = vsel %vm82_vm0, %v92_v17, 0.0  ;;  %v102_v24 = vsel %vm82_vm0, %v100_v18, 0.0 }
  0x88   :  { %v105_v27 = vsel %vm104_vm1, %v98_v23, 0.0  ;;  %v117_v28 = vsel %vm104_vm1, %v102_v24, 0.0 }
  0x8b   :  { %v80_v19 = vpop.permute.xlu0 %79 }
  0x8c   :  { %v81_v22 = vperm.slane %v80_v19, 0 }
  0x8e   :  { %vm83_vm2 = vcmp.lt.s32.totalorder %v73_v13, %v81_v22 }
  0x8f   :  { %v99_v25 = vsel %vm83_vm2, %v93_v20, 0.0  ;;  %v103_v26 = vsel %vm83_vm2, %v101_v21, 0.0 }
  0x90   :  { %v106_v29 = vsel %vm104_vm1, %v99_v25, 0.0  ;;  %v118_v30 = vsel %vm104_vm1, %v103_v26, 0.0 }
  0x91   :  { %v107_v31 = vadd.f32 %v106_v29, %v105_v27  ;;  %v119_v32 = vadd.f32 %v118_v30, %v117_v28 }
  0x93   :  { %v108_v33 = vsel %vm104_vm1, %v107_v31, 0.0  ;;  %v120_v34 = vsel %vm104_vm1, %v119_v32, 0.0 }
  0x94   :  { %v109_v35 = vrot.slane %v108_v33, 4  ;;  %v121_v36 = vrot.slane %v120_v34, 4 }
  0x96   :  { %v110_v37 = vadd.f32 %v109_v35, %v108_v33  ;;  %v122_v38 = vadd.f32 %v121_v36, %v120_v34 }
  0x98   :  { %v111_v39 = vrot.slane %v110_v37, 2  ;;  %v123_v40 = vrot.slane %v122_v38, 2 }
  0x9a   :  { %v112_v41 = vadd.f32 %v111_v39, %v110_v37  ;;  %v124_v42 = vadd.f32 %v123_v40, %v122_v38 }
  0x9c   :  { %v113_v43 = vrot.slane %v112_v41, 1  ;;  %v125_v44 = vrot.slane %v124_v42, 1 }
  0x9e   :  { %v114_v45 = vadd.f32 %v113_v43, %v112_v41  ;;  %v126_v46 = vadd.f32 %v125_v44, %v124_v42 }
  0xa0   :  { %116 = vst.msk [vmem:[#allocation8] sm:$0x1] %vm115_vm3, %v114_v45 }
  0xa1   :  { %138 = dma.vmem_to_hbm [thread:$0]  %s134_s11, 16, %s136_s14, [#allocation4]   ;;  %127 = vst.msk [vmem:[#allocation9] sm:$0x1] %vm115_vm3, %v126_v46 }
  0xa2   :  { %149 = dma.vmem_to_hbm [thread:$0]  %s145_s16, 16, %s147_s19, [#allocation10]  }
  0xa3   :  { %295 = dma.done.wait [#allocation4], 16  }
  0xa4   :  { %296 = vsyncadd [#allocation4], 4294967280 }
  0xa5   :  { %297 = dma.done.wait [#allocation10], 16  }
  0xa6   :  { %298 = vsyncadd [#allocation10], 4294967280 }
  0xa7   :  { %158 = vsyncpa [#allocation3], 1 }
  0xa8   :  { %159 = vsyncpa [#allocation6], 1 }
  0xa9   :  { %160 = vsyncpa [#allocation4], 1 }
  0xaa   :  { %161 = vsyncpa [#allocation10], 1 }

</bundles_post_ra>
